<compile_context>
chip_gen: v7x
topology: tpu7x:2x2x1
jax: 0.10.0
libtpu: 0.0.40
codegen_flags: <defaults>
</compile_context>

<pallas_src>
from functools import partial

import jax
import jax.numpy as jnp
from jax import lax
from jax.experimental import pallas as pl
from jax.experimental.pallas import tpu as pltpu

_LN_EPS = 1e-5  # PyTorch nn.LayerNorm default


def _round_up(v, m):
    return ((v + m - 1) // m) * m


def _vmem_capacity_bytes(default=64 << 20):
    """Best-effort per-core VMEM capacity query (trace-time)."""
    try:
        info = pltpu.get_tpu_info()
        cap = getattr(info, "vmem_capacity_bytes", None)
        if cap:
            return int(cap)
    except Exception:
        pass
    return default


def _expand_norm_kernel(x_ref, wT_ref, gmean_ref, gscale_ref, beta_ref, o_ref):
    # x_ref:      (tm, dim)    original dtype (f32) -- cast in-kernel
    # wT_ref:     (dim, C)     compute dtype (bf16 by default), C = 8*dim
    # gmean_ref:  (C, G)       f32; column j holds 1/g on the rows of group j
    # gscale_ref: (G, C)       f32; row j holds gamma (tiled) on the cols of group j
    # beta_ref:   (1, C)       f32 LayerNorm bias tiled over the G groups
    # o_ref:      (tm, C)      store dtype (bf16 by default)
    xb = x_ref[...].astype(wT_ref.dtype)                                           # in-kernel cast (VPU, hidden)
    y = jnp.dot(xb, wT_ref[...], preferred_element_type=jnp.float32)               # (tm, C) f32
    # per-group stats via back-to-back MXU segmented reductions (E[y^2] - mu^2 form)
    mu_g = jnp.dot(y, gmean_ref[...], preferred_element_type=jnp.float32)          # (tm, G)
    sq_g = jnp.dot(y * y, gmean_ref[...], preferred_element_type=jnp.float32)      # (tm, G)
    var_g = jnp.maximum(sq_g - mu_g * mu_g, 0.0)
    inv_g = lax.rsqrt(var_g + _LN_EPS)                                             # (tm, G)
    # broadcast-back with gamma folded in; beta folded into the shift constant
    scale = jnp.dot(inv_g, gscale_ref[...], preferred_element_type=jnp.float32)    # (tm, C)
    shift = (jnp.dot(-(mu_g * inv_g), gscale_ref[...],
                     preferred_element_type=jnp.float32) + beta_ref[...])          # (tm, C)
    o_ref[...] = (y * scale + shift).astype(o_ref.dtype)


@partial(jax.jit, static_argnames=("H", "W", "dim_scale", "tm",
                                   "compute_dtype", "store_dtype", "out_dtype"))
def final_patch_expand_x4(x, weight, gamma, beta, *, H, W, dim_scale=4, tm=512,
                          compute_dtype=jnp.bfloat16, store_dtype=None,
                          out_dtype=jnp.float32):
    """
    x:      (B, H*W, dim)
    weight: (8*dim, dim)    -- nn.Linear convention (out_features, in_features), no bias
    gamma, beta: (dim//2,)  -- LayerNorm affine params
    returns: (B, dim//2, dim_scale*H, dim_scale*W)  (NCHW)
    """
    B, L, dim = x.shape
    assert L == H * W, "input feature has wrong size"
    assert dim % 2 == 0
    C = 8 * dim
    g = dim // 2
    G = dim_scale * dim_scale               # == 16 groups per token (p1, p2)
    assert G * g == C, "dim_scale inconsistent with 8*dim expansion"
    N = B * L

    if store_dtype is None:
        store_dtype = compute_dtype          # bf16 store by default; f32 on exact path
    x_bytes = jnp.dtype(x.dtype).itemsize
    in_bytes = jnp.dtype(compute_dtype).itemsize
    st_bytes = jnp.dtype(store_dtype).itemsize

    # --- generation-aware VMEM budget -------------------------------------------
    vmem_cap = _vmem_capacity_bytes()
    if vmem_cap >= (96 << 20):               # v5e / v6e class: 128 MiB per core
        budget = 96 << 20
        multi_tc = False                     # single TensorCore per chip
    else:                                    # v7x class: 64 MiB per TC, 2 TCs
        budget = 48 << 20
        multi_tc = True

    def vmem_estimate(t):
        return (2 * t * dim * x_bytes        # x tile (double-buffered, original dtype)
                + 2 * dim * C * in_bytes     # resident weight (double-buffered)
                + 2 * t * C * st_bytes       # out tile (double-buffered)
                + 5 * t * C * 4              # f32 intermediates (y, scale, shift, temps)
                + 2 * 4 * (2 * C * G + C))   # group matrices + beta (double-buffered)

    # --- tile-size selection ------------------------------------------------------
    tm_eff = min(int(tm), _round_up(N, 8))   # never pad beyond one tile's worth
    while tm_eff > 64 and vmem_estimate(tm_eff) > budget:
        tm_eff = max(64, _round_up(tm_eff // 2, 8))
    if multi_tc and N < 2 * tm_eff:          # keep grid >= 2 only where megacore exists
        tm_eff = max(8, _round_up((N + 1) // 2, 8))

    n_tiles = (N + tm_eff - 1) // tm_eff
    Npad = n_tiles * tm_eff
    vmem_limit = int(min(max(vmem_estimate(tm_eff) + (8 << 20), 32 << 20),
                         budget + (8 << 20)))

    # --- operands (constant pieces fold under jit) --------------------------------
    xt = x.reshape(N, dim)                   # stays in its original dtype; cast in-kernel
    if Npad != N:
        xt = jnp.pad(xt, ((0, Npad - N), (0, 0)))   # pad rows produce finite junk, dropped
    wT = jnp.asarray(weight, compute_dtype).T                       # (dim, C)

    group_id = jnp.arange(C, dtype=jnp.int32) // g                  # (C,)
    onehot = (group_id[:, None] == jnp.arange(G, dtype=jnp.int32)[None, :]
              ).astype(jnp.float32)                                 # (C, G)
    gmean = onehot / g                                              # (C, G)
    gamma_t = jnp.tile(jnp.asarray(gamma, jnp.float32), G)          # (C,)
    gscale = onehot.T * gamma_t[None, :]                            # (G, C) gamma folded in
    beta_t = jnp.tile(jnp.asarray(beta, jnp.float32), G).reshape(1, C)

    # --- fused Linear + per-group LayerNorm ---------------------------------------
    y = pl.pallas_call(
        _expand_norm_kernel,
        out_shape=jax.ShapeDtypeStruct((Npad, C), store_dtype),
        grid_spec=pltpu.PrefetchScalarGridSpec(
            num_scalar_prefetch=0,
            grid=(n_tiles,),
            in_specs=[
                pl.BlockSpec((tm_eff, dim), lambda i: (i, 0)),
                pl.BlockSpec((dim, C), lambda i: (0, 0)),
                pl.BlockSpec((C, G), lambda i: (0, 0)),
                pl.BlockSpec((G, C), lambda i: (0, 0)),
                pl.BlockSpec((1, C), lambda i: (0, 0)),
            ],
            out_specs=pl.BlockSpec((tm_eff, C), lambda i: (i, 0)),
        ),
        compiler_params=pltpu.CompilerParams(
            dimension_semantics=("parallel",),
            vmem_limit_bytes=vmem_limit,
        ),
    )(xt, wT, gmean, gscale, beta_t)

    y = y[:N]

    # pixel-shuffle + NCHW permute as ONE 6-D transpose (single extra HBM pass),
    # reading the bf16 kernel output and upcasting to out_dtype on the write.
    # out[b, c, 4h+p1, 4w+p2] = y[b, h, w, (p1*4 + p2)*g + c]
    p = dim_scale
    y6 = y.reshape(B, H, W, p, p, g)
    out = y6.transpose(0, 5, 1, 3, 2, 4).reshape(B, g, H * p, W * p)
    return out.astype(out_dtype)


def _reference(x, H, W, weight, gamma, beta, dim_scale=4, eps=_LN_EPS):
    B, L, dim = x.shape
    g = dim // 2
    y = jnp.einsum("blc,oc->blo", x, weight)                        # (B, L, 8*dim)
    y = y.reshape(B, H, W, dim_scale, dim_scale, g)
    y = y.transpose(0, 1, 3, 2, 4, 5).reshape(B, H * dim_scale, W * dim_scale, g)
    mu = y.mean(-1, keepdims=True)
    var = ((y - mu) ** 2).mean(-1, keepdims=True)
    y = (y - mu) / jnp.sqrt(var + eps) * gamma + beta
    return y.transpose(0, 3, 1, 2)


if __name__ == "__main__":
    B, H, W, dim = 2, 8, 8, 32            # x: (B, H*W, dim) = (2, 64, 32)
    key = jax.random.PRNGKey(0)
    kx, kw, kg, kb = jax.random.split(key, 4)

    x = jax.random.normal(kx, (B, H * W, dim), jnp.float32)
    weight = jax.random.normal(kw, (8 * dim, dim), jnp.float32) * 0.05   # Linear(dim, 8*dim, bias=False)
    gamma = 1.0 + 0.1 * jax.random.normal(kg, (dim // 2,), jnp.float32)  # LayerNorm(dim//2) weight
    beta = 0.1 * jax.random.normal(kb, (dim // 2,), jnp.float32)         # LayerNorm(dim//2) bias

    ref = _reference(x, H, W, weight, gamma, beta)

    # Exact-math path (f32 matmul inputs / f32 store): tight tolerance.
    out_f32 = final_patch_expand_x4(x, weight, gamma, beta, H=H, W=W,
                                    compute_dtype=jnp.float32)
    out_f32 = jax.block_until_ready(out_f32)
    assert out_f32.shape == (B, dim // 2, 4 * H, 4 * W), out_f32.shape
    assert jnp.allclose(out_f32, ref, atol=1e-4, rtol=1e-4), \
        float(jnp.max(jnp.abs(out_f32 - ref)))

    # Default fast path (bf16 matmul inputs + bf16 store, f32 LayerNorm math, f32 result).
    out = final_patch_expand_x4(x, weight, gamma, beta, H=H, W=W)
    out = jax.block_until_ready(out)
    assert out.shape == (B, dim // 2, 4 * H, 4 * W), out.shape
    assert jnp.allclose(out, ref, atol=5e-2, rtol=5e-2), \
        float(jnp.max(jnp.abs(out - ref)))

    print("KERNEL_OK")
</pallas_src>

<mosaic_0001>
module attributes {stable_mosaic.version = 11 : i64} {
  func.func @_expand_norm_kernel(%arg0: i32, %arg1: memref<64x32xf32, #tpu.memory_space<vmem>>, %arg2: memref<32x256xf32, #tpu.memory_space<vmem>>, %arg3: memref<256x16xf32, #tpu.memory_space<vmem>>, %arg4: memref<16x256xf32, #tpu.memory_space<vmem>>, %arg5: memref<1x256xf32, #tpu.memory_space<vmem>>, %arg6: memref<64x256xf32, #tpu.memory_space<vmem>>) attributes {dimension_semantics = [#tpu.dimension_semantics<parallel>], iteration_bounds = array<i64: 2>, scalar_prefetch = 0 : i64, scratch_operands = 0 : i64, tpu.core_type = #tpu.core_type<tc>, window_params = [{transform_indices = @transform_0, window_bounds = array<i64: 64, 32>}, {pipeline_mode = #tpu.pipeline_mode<synchronous>, transform_indices = @transform_1, window_bounds = array<i64: 32, 256>}, {pipeline_mode = #tpu.pipeline_mode<synchronous>, transform_indices = @transform_2, window_bounds = array<i64: 256, 16>}, {pipeline_mode = #tpu.pipeline_mode<synchronous>, transform_indices = @transform_3, window_bounds = array<i64: 16, 256>}, {pipeline_mode = #tpu.pipeline_mode<synchronous>, transform_indices = @transform_4, window_bounds = array<i64: 1, 256>}, {transform_indices = @transform_5, window_bounds = array<i64: 64, 256>}]} {
    %c0 = arith.constant 0 : index
    %c0_0 = arith.constant 0 : index
    %0 = vector.load %arg1[%c0, %c0_0] : memref<64x32xf32, #tpu.memory_space<vmem>>, vector<64x32xf32>
    %c0_1 = arith.constant 0 : index
    %c0_2 = arith.constant 0 : index
    %1 = vector.load %arg2[%c0_1, %c0_2] : memref<32x256xf32, #tpu.memory_space<vmem>>, vector<32x256xf32>
    %cst = arith.constant dense<0.000000e+00> : vector<64x256xf32>
    %2 = tpu.matmul %0, %1, %cst {dimension_numbers = #tpu.dot_dimension_numbers<[1], [0], [0], [1], [0, 0, 1, 1], [], []>} : vector<64x32xf32>, vector<32x256xf32>, vector<64x256xf32> -> vector<64x256xf32>
    %c0_3 = arith.constant 0 : index
    %c0_4 = arith.constant 0 : index
    %3 = vector.load %arg3[%c0_3, %c0_4] : memref<256x16xf32, #tpu.memory_space<vmem>>, vector<256x16xf32>
    %cst_5 = arith.constant dense<0.000000e+00> : vector<64x16xf32>
    %4 = tpu.matmul %2, %3, %cst_5 {dimension_numbers = #tpu.dot_dimension_numbers<[1], [0], [0], [1], [0, 0, 1, 1], [], []>} : vector<64x256xf32>, vector<256x16xf32>, vector<64x16xf32> -> vector<64x16xf32>
    %5 = arith.mulf %2, %2 : vector<64x256xf32>
    %c0_6 = arith.constant 0 : index
    %c0_7 = arith.constant 0 : index
    %6 = vector.load %arg3[%c0_6, %c0_7] : memref<256x16xf32, #tpu.memory_space<vmem>>, vector<256x16xf32>
    %cst_8 = arith.constant dense<0.000000e+00> : vector<64x16xf32>
    %7 = tpu.matmul %5, %6, %cst_8 {dimension_numbers = #tpu.dot_dimension_numbers<[1], [0], [0], [1], [0, 0, 1, 1], [], []>} : vector<64x256xf32>, vector<256x16xf32>, vector<64x16xf32> -> vector<64x16xf32>
    %8 = arith.mulf %4, %4 : vector<64x16xf32>
    %9 = arith.subf %7, %8 : vector<64x16xf32>
    %cst_9 = arith.constant 0.000000e+00 : f32
    %10 = vector.broadcast %cst_9 : f32 to vector<64x16xf32>
    %11 = arith.maximumf %9, %10 : vector<64x16xf32>
    %cst_10 = arith.constant 9.99999974E-6 : f32
    %12 = vector.broadcast %cst_10 : f32 to vector<64x16xf32>
    %13 = arith.addf %11, %12 : vector<64x16xf32>
    %14 = math.rsqrt %13 : vector<64x16xf32>
    %c0_11 = arith.constant 0 : index
    %c0_12 = arith.constant 0 : index
    %15 = vector.load %arg4[%c0_11, %c0_12] : memref<16x256xf32, #tpu.memory_space<vmem>>, vector<16x256xf32>
    %cst_13 = arith.constant dense<0.000000e+00> : vector<64x256xf32>
    %16 = tpu.matmul %14, %15, %cst_13 {dimension_numbers = #tpu.dot_dimension_numbers<[1], [0], [0], [1], [0, 0, 1, 1], [], []>} : vector<64x16xf32>, vector<16x256xf32>, vector<64x256xf32> -> vector<64x256xf32>
    %17 = arith.mulf %4, %14 : vector<64x16xf32>
    %cst_14 = arith.constant 0.000000e+00 : f32
    %18 = vector.broadcast %cst_14 : f32 to vector<64x16xf32>
    %19 = arith.subf %18, %17 : vector<64x16xf32>
    %c0_15 = arith.constant 0 : index
    %c0_16 = arith.constant 0 : index
    %20 = vector.load %arg4[%c0_15, %c0_16] : memref<16x256xf32, #tpu.memory_space<vmem>>, vector<16x256xf32>
    %cst_17 = arith.constant dense<0.000000e+00> : vector<64x256xf32>
    %21 = tpu.matmul %19, %20, %cst_17 {dimension_numbers = #tpu.dot_dimension_numbers<[1], [0], [0], [1], [0, 0, 1, 1], [], []>} : vector<64x16xf32>, vector<16x256xf32>, vector<64x256xf32> -> vector<64x256xf32>
    %c0_18 = arith.constant 0 : index
    %c0_19 = arith.constant 0 : index
    %22 = vector.load %arg5[%c0_18, %c0_19] : memref<1x256xf32, #tpu.memory_space<vmem>>, vector<1x256xf32>
    %23 = vector.broadcast %22 : vector<1x256xf32> to vector<64x256xf32>
    %24 = arith.addf %21, %23 : vector<64x256xf32>
    %25 = arith.mulf %2, %16 : vector<64x256xf32>
    %26 = arith.addf %25, %24 : vector<64x256xf32>
    %c0_20 = arith.constant 0 : index
    %c0_21 = arith.constant 0 : index
    %27 = vector.load %arg6[%c0_20, %c0_21] : memref<64x256xf32, #tpu.memory_space<vmem>>, vector<64x256xf32>
    tpu.vector_store %arg6[%c0_20, %c0_21], %26 {strides = array<i32>} : memref<64x256xf32, #tpu.memory_space<vmem>>, vector<64x256xf32>,
    return
  }
  func.func @transform_0(%arg0: i32) -> (i32, i32) {
    %c0_i32 = arith.constant 0 : i32
    %c0_i32_0 = arith.constant 0 : i32
    return %arg0, %c0_i32 : i32, i32
  }
  func.func @transform_1(%arg0: i32) -> (i32, i32) {
    %c0_i32 = arith.constant 0 : i32
    %c0_i32_0 = arith.constant 0 : i32
    %c0_i32_1 = arith.constant 0 : i32
    return %c0_i32, %c0_i32_0 : i32, i32
  }
  func.func @transform_2(%arg0: i32) -> (i32, i32) {
    %c0_i32 = arith.constant 0 : i32
    %c0_i32_0 = arith.constant 0 : i32
    %c0_i32_1 = arith.constant 0 : i32
    return %c0_i32, %c0_i32_0 : i32, i32
  }
  func.func @transform_3(%arg0: i32) -> (i32, i32) {
    %c0_i32 = arith.constant 0 : i32
    %c0_i32_0 = arith.constant 0 : i32
    %c0_i32_1 = arith.constant 0 : i32
    return %c0_i32, %c0_i32_0 : i32, i32
  }
  func.func @transform_4(%arg0: i32) -> (i32, i32) {
    %c0_i32 = arith.constant 0 : i32
    %c0_i32_0 = arith.constant 0 : i32
    %c0_i32_1 = arith.constant 0 : i32
    return %c0_i32, %c0_i32_0 : i32, i32
  }
  func.func @transform_5(%arg0: i32) -> (i32, i32) {
    %c0_i32 = arith.constant 0 : i32
    %c0_i32_0 = arith.constant 0 : i32
    return %arg0, %c0_i32 : i32, i32
  }
}

</mosaic_0001>

<bundles_post_ra>
// kernel: tile.13
= control target key start
LH: loop header
LB: loop body
LE: loop exit
PB: predicated region body
PF: predicated region fallthrough
CT: control target
= control target key end

     0   :  { %s28_s0 = inlined_call_operand.vmem [shape: f32[16], index: 0, kind: input, shape index: {}]   ;;  %s29_s1 = inlined_call_operand.vmem [shape: f32[16,16], index: 1, kind: output, shape index: {}]  }
   0x1   :  { %v4_v0 = vld [vmem:[%s28_s0] ss:$0 sm:$0xff] }
   0x2   :  { %5 = vst [vmem:[%s29_s1] sm:$0xff] %v4_v0  ;;  %8 = vst [vmem:[%s29_s1 + $0x8] sm:$0xff] %v4_v0 }

// kernel: mul.5
= control target key start
LH: loop header
LB: loop body
LE: loop exit
PB: predicated region body
PF: predicated region fallthrough
CT: control target
= control target key end

     0   :  { %s7_s6 = smov 3  ;;  %s21_s9 = smov 3  ;;  %vm4_vm0 = vcmask 130048   ;;  %vm11_vm1 = vcmask 1048448   ;;  %vm18_vm2 = vcmask 917248   ;;  %vm25_vm3 = vcmask 786048   ;;  %s119_s0 = inlined_call_operand.vmem [shape: f32[16,16], index: 0, kind: input, shape index: {}]   ;;  %s120_s1 = inlined_call_operand.vmem [shape: f32[256], index: 1, kind: output, shape index: {}]  }
   0x1   :  { %v61_v0 = vld [vmem:[%s119_s0 + $0x7] ss:$8 sm:%s7_s6]   ;;  %s75_s10 = smov 112   ;;  %v63_v1 = vld [vmem:[%s119_s0 + $0x5] ss:$8 sm:%s21_s9]   ;;  %s14_s13 = smov 3 }
   0x2   :  { %9 = vrot.lane.b32.xlu0 %v61_v0, %s75_s10  ;;  %s76_s14 = smov 80   ;;  %v62_v2 = vld [vmem:[%s119_s0 + $0x6] ss:$8 sm:%s14_s13]   ;;  %s28_s17 = smov 3  ;;  %vm32_vm4 = vcmask 654848   ;;  %vm39_vm5 = vcmask 523648  }
   0x3   :  { %23 = vrot.lane.b32.xlu1 %v63_v1, %s76_s14  ;;  %v64_v3 = vld [vmem:[%s119_s0 + $0x4] ss:$8 sm:%s28_s17]   ;;  %s35_s20 = smov 3  ;;  %s42_s21 = smov 3  ;;  %vm46_vm6 = vcmask 392448   ;;  %vm53_vm7 = vcmask 261248  }
   0x4   :  { %s77_s22 = smov 96   ;;  %s78_s23 = smov 64   ;;  %v65_v4 = vld [vmem:[%s119_s0 + $0x3] ss:$8 sm:%s35_s20]   ;;  %v66_v5 = vld [vmem:[%s119_s0 + $0x2] ss:$8 sm:%s42_s21]  }
   0x5   :  { %s2_s26 = smov 3  ;;  %s49_s29 = smov 3 }
   0x6   :  { %16 = vrot.lane.b32.xlu0 %v62_v2, %s77_s22  ;;  %v3_v6 = vld [vmem:[%s119_s0] ss:$8 sm:%s2_s26]   ;;  %s79_s3 = smov 48   ;;  %s80_s4 = smov 32  }
   0x7   :  { %30 = vrot.lane.b32.xlu1 %v64_v3, %s78_s23  ;;  %5 = vst.msk [vmem:[#allocation0] sm:$0x3] %vm4_vm0, %v3_v6   ;;  %v67_v7 = vld [vmem:[%s119_s0 + $0x1] ss:$8 sm:%s49_s29]   ;;  %s81_s0 = smov 16  }
   0xa   :  { %37 = vrot.lane.b32.xlu0 %v65_v4, %s79_s3 }
   0xb   :  { %44 = vrot.lane.b32.xlu1 %v66_v5, %s80_s4 }
   0xe   :  { %51 = vrot.lane.b32.xlu0 %v67_v7, %s81_s0 }
  0x74   :  { %v10_v8 = vpop.permute.xlu0 %9  }
  0x75   :  { %12 = vst.msk [vmem:[#allocation0] sm:$0x3] %vm11_vm1, %v10_v8   ;;  %v24_v9 = vpop.permute.xlu1 %23  }
  0x78   :  { %v17_v10 = vpop.permute.xlu0 %16  }
  0x79   :  { %19 = vst.msk [vmem:[#allocation0] sm:$0x3] %vm18_vm2, %v17_v10   ;;  %v31_v11 = vpop.permute.xlu1 %30  }
  0x7a   :  { %26 = vst.msk [vmem:[#allocation0] sm:$0x3] %vm25_vm3, %v24_v9  }
  0x7b   :  { %33 = vst.msk [vmem:[#allocation0] sm:$0x3] %vm32_vm4, %v31_v11  }
  0x7c   :  { %v38_v12 = vpop.permute.xlu0 %37  }
  0x7d   :  { %40 = vst.msk [vmem:[#allocation0] sm:$0x3] %vm39_vm5, %v38_v12   ;;  %v45_v13 = vpop.permute.xlu1 %44  }
  0x7e   :  { %47 = vst.msk [vmem:[#allocation0] sm:$0x3] %vm46_vm6, %v45_v13  }
  0x80   :  { %v52_v14 = vpop.permute.xlu0 %51  }
  0x81   :  { %54 = vst.msk [vmem:[#allocation0] sm:$0x3] %vm53_vm7, %v52_v14  }
  0x88   :  { %v58_v15 = vld [vmem:[#allocation0] sm:$0x3] }
  0x89   :  { %60 = vst [vmem:[%s120_s1] sm:$0x3] %v58_v15 }

// kernel: tile.19
= control target key start
LH: loop header
LB: loop body
LE: loop exit
PB: predicated region body
PF: predicated region fallthrough
CT: control target
= control target key end

     0   :  { %s7_s6 = smov 3  ;;  %s21_s9 = smov 3  ;;  %vm4_vm0 = vcmask 130048   ;;  %vm11_vm1 = vcmask 1048448   ;;  %vm18_vm2 = vcmask 917248   ;;  %vm25_vm3 = vcmask 786048   ;;  %s128_s0 = inlined_call_operand.vmem [shape: f32[16,16], index: 0, kind: input, shape index: {}]   ;;  %s129_s1 = inlined_call_operand.vmem [shape: f32[1,256], index: 1, kind: output, shape index: {}]  }
   0x1   :  { %v66_v0 = vld [vmem:[%s128_s0 + $0x7] ss:$8 sm:%s7_s6]   ;;  %s81_s10 = smov 112   ;;  %v68_v1 = vld [vmem:[%s128_s0 + $0x5] ss:$8 sm:%s21_s9]   ;;  %s14_s13 = smov 3 }
   0x2   :  { %9 = vrot.lane.b32.xlu0 %v66_v0, %s81_s10  ;;  %s82_s14 = smov 80   ;;  %v67_v2 = vld [vmem:[%s128_s0 + $0x6] ss:$8 sm:%s14_s13]   ;;  %s28_s17 = smov 3  ;;  %vm32_vm4 = vcmask 654848   ;;  %vm39_vm5 = vcmask 523648  }
   0x3   :  { %23 = vrot.lane.b32.xlu1 %v68_v1, %s82_s14  ;;  %v69_v3 = vld [vmem:[%s128_s0 + $0x4] ss:$8 sm:%s28_s17]   ;;  %s35_s20 = smov 3  ;;  %s42_s21 = smov 3  ;;  %vm46_vm6 = vcmask 392448   ;;  %vm53_vm7 = vcmask 261248  }
   0x4   :  { %s83_s22 = smov 96   ;;  %s84_s23 = smov 64   ;;  %v70_v4 = vld [vmem:[%s128_s0 + $0x3] ss:$8 sm:%s35_s20]   ;;  %v71_v5 = vld [vmem:[%s128_s0 + $0x2] ss:$8 sm:%s42_s21]  }
   0x5   :  { %s2_s26 = smov 3  ;;  %s49_s29 = smov 3 }
   0x6   :  { %16 = vrot.lane.b32.xlu0 %v67_v2, %s83_s22  ;;  %v3_v6 = vld [vmem:[%s128_s0] ss:$8 sm:%s2_s26]   ;;  %s85_s3 = smov 48   ;;  %s86_s4 = smov 32  }
   0x7   :  { %30 = vrot.lane.b32.xlu1 %v69_v3, %s84_s23  ;;  %5 = vst.msk [vmem:[#allocation0] ss:$8 sm:$0x3] %vm4_vm0, %v3_v6   ;;  %v72_v7 = vld [vmem:[%s128_s0 + $0x1] ss:$8 sm:%s49_s29]   ;;  %s87_s0 = smov 16  }
   0xa   :  { %37 = vrot.lane.b32.xlu0 %v70_v4, %s85_s3 }
   0xb   :  { %44 = vrot.lane.b32.xlu1 %v71_v5, %s86_s4 }
   0xe   :  { %51 = vrot.lane.b32.xlu0 %v72_v7, %s87_s0 }
  0x74   :  { %v10_v8 = vpop.permute.xlu0 %9  }
  0x75   :  { %12 = vst.msk [vmem:[#allocation0] ss:$8 sm:$0x3] %vm11_vm1, %v10_v8   ;;  %v24_v9 = vpop.permute.xlu1 %23  }
  0x78   :  { %v17_v10 = vpop.permute.xlu0 %16  }
  0x79   :  { %19 = vst.msk [vmem:[#allocation0] ss:$8 sm:$0x3] %vm18_vm2, %v17_v10   ;;  %v31_v11 = vpop.permute.xlu1 %30  }
  0x7a   :  { %26 = vst.msk [vmem:[#allocation0] ss:$8 sm:$0x3] %vm25_vm3, %v24_v9  }
  0x7b   :  { %33 = vst.msk [vmem:[#allocation0] ss:$8 sm:$0x3] %vm32_vm4, %v31_v11  }
  0x7c   :  { %v38_v12 = vpop.permute.xlu0 %37  }
  0x7d   :  { %40 = vst.msk [vmem:[#allocation0] ss:$8 sm:$0x3] %vm39_vm5, %v38_v12   ;;  %v45_v13 = vpop.permute.xlu1 %44  }
  0x7e   :  { %47 = vst.msk [vmem:[#allocation0] ss:$8 sm:$0x3] %vm46_vm6, %v45_v13  }
  0x80   :  { %v52_v14 = vpop.permute.xlu0 %51  }
  0x81   :  { %54 = vst.msk [vmem:[#allocation0] ss:$8 sm:$0x3] %vm53_vm7, %v52_v14  }
  0x88   :  { %v58_v15 = vld [vmem:[#allocation0] sm:$0x1]  ;;  %v62_v16 = vld [vmem:[#allocation0 + $0x8] sm:$0x1] }
  0x89   :  { %60 = vst [vmem:[%s129_s1] sm:$0x1] %v58_v15  ;;  %73 = vst [vmem:[%s129_s1 + $0x1] sm:$0x1] %v62_v16 }

// kernel: final_patch_expand_x4.1
= control target key start
LH: loop header
LB: loop body
LE: loop exit
PB: predicated region body
PF: predicated region fallthrough
CT: control target
= control target key end

     0   :  { %s1404_s18 = smov 0   ;;  %s1857_s0 = inlined_call_operand.vmem [shape: f32[128,32], index: 0, kind: input, shape index: {}]   ;;  %s1858_s1 = inlined_call_operand.vmem [shape: f32[32,256], index: 1, kind: input, shape index: {}]   ;;  %s1859_s2 = inlined_call_operand.vmem [shape: f32[256,16], index: 2, kind: input, shape index: {}]   ;;  %s1860_s3 = inlined_call_operand.vmem [shape: f32[16,256], index: 3, kind: input, shape index: {}]   ;;  %s1861_s4 = inlined_call_operand.vmem [shape: f32[1,256], index: 4, kind: input, shape index: {}]   ;;  %s1862_s5 = inlined_call_operand.vmem [shape: f32[128,256], index: 5, kind: output, shape index: {}]  }
   0x1 LB: > { %s1095_s19 = sadd.s32 4294967295, %s1371_s18   ;;  %p1099_p0 = scmp.ge.s32.totalorder %s1371_s18, 1  ;;  %s1371_s18 = sphi %s1404_s18, %s15_s18  }
   0x2   : > { %p188_p1 = scmp.lt.s32.totalorder %s1371_s18, 3 }
   0x4   : > { %p189_p2 = pnand %p1099_p0, %p188_p1 }
   0x5   : > { %v239_v0 = vld [vmem:[%s1858_s1 + $0x8] sm:$0xff] (!%p189_p2)  ;;  %v241_v1 = vld [vmem:[%s1858_s1 + $0x18] sm:$0xff] (!%p189_p2)  ;;  %v238_v2 = vld [vmem:[%s1858_s1] sm:$0xff] (!%p189_p2)  ;;  %s1100_s26 = sshll.u32 (!%p189_p2), %s1095_s19, 3  ;;  %v1373_v7 = vmov (!%p189_p2), 0.0   ;;  %vm246_vm0 = vcmask (!%p189_p2), 261120  }
   0x6   : > { %192 = sbr.rel (%p189_p2) target bundleno = 717 (0x2cd), region = 40  ;;  %v1244_v3 = vpack.c.bf16 (!%p189_p2), %v241_v1, %v239_v0  ;;  %v240_v4 = vld [vmem:[%s1858_s1 + $0x10] sm:$0xff] (!%p189_p2)  ;;  %v243_v5 = vld [vmem:[%s1858_s1 + $0x28] sm:$0xff] (!%p189_p2)  ;;  %v245_v6 = vld [vmem:[%s1858_s1 + $0x38] sm:$0xff] (!%p189_p2)  ;;  %335 = vmatprep.mubr.f32.mxu0 (!%p189_p2), %v1373_v7  ;;  %p218_p3 = scmp.lt.s32.totalorder (!%p189_p2), %s1100_s26, 15  ;;  %vm686_vm1 = vcmask (!%p189_p2), 130048  }
   0x7   : > { %v1246_v8 = vpack.c.bf16 (!%p189_p2), %v240_v4, %v238_v2  ;;  %v1248_v9 = vpack.c.bf16 (!%p189_p2), %v245_v6, %v243_v5  ;;  %v242_v10 = vld [vmem:[%s1858_s1 + $0x20] sm:$0xff] (!%p189_p2)  ;;  %v244_v11 = vld [vmem:[%s1858_s1 + $0x30] sm:$0xff] (!%p189_p2)  ;;  %v401_v13 = vld [vmem:[%s1859_s2 + $0x88] sm:$0xff] (!%p189_p2) }
   0x8   : > { %v400_v12 = vld [vmem:[%s1859_s2 + $0x80] sm:$0xff] (!%p189_p2)  ;;  %1245 = vmatprep.subr.bf16.mxu0 (!%p189_p2), %v1244_v3  ;;  %v385_v15 = vld [vmem:[%s1859_s2 + $0x8] sm:$0xff] (!%p189_p2)  ;;  %v1250_v16 = vpack.c.bf16 (!%p189_p2), %v244_v11, %v242_v10  ;;  %v402_v19 = vld [vmem:[%s1859_s2 + $0x90] sm:$0xff] (!%p189_p2) }
   0x9   : > { %v384_v14 = vld [vmem:[%s1859_s2] sm:$0xff] (!%p189_p2)  ;;  %1247 = vmatpush1.bf16.msra.mxu0 (!%p189_p2), %v1246_v8  ;;  %v1451_v17 = vpack.c.bf16 (!%p189_p2), %v401_v13, %v400_v12  ;;  %v403_v20 = vld [vmem:[%s1859_s2 + $0x98] sm:$0xff] (!%p189_p2)  ;;  %v386_v21 = vld [vmem:[%s1859_s2 + $0x10] sm:$0xff] (!%p189_p2) }
   0xa   : > { %v1453_v18 = vpack.c.bf16 (!%p189_p2), %v385_v15, %v384_v14  ;;  %1249 = vmatprep.subr.bf16.mxu0 (!%p189_p2), %v1248_v9  ;;  %v1465_v22 = vpack.c.bf16 (!%p189_p2), %v403_v20, %v402_v19  ;;  %v387_v23 = vld [vmem:[%s1859_s2 + $0x18] sm:$0xff] (!%p189_p2)  ;;  %v404_v24 = vld [vmem:[%s1859_s2 + $0xa0] sm:$0xff] (!%p189_p2)  ;;  %v405_v25 = vld [vmem:[%s1859_s2 + $0xa8] sm:$0xff] (!%p189_p2) }
   0xb   : > { %1253 = vmatprep.subr.bf16.mxu1 (!%p189_p2), %v1451_v17  ;;  %v1483_v26 = vpack.c.bf16 (!%p189_p2), %v387_v23, %v386_v21  ;;  %v388_v28 = vld [vmem:[%s1859_s2 + $0x20] sm:$0xff] (!%p189_p2)  ;;  %v389_v29 = vld [vmem:[%s1859_s2 + $0x28] sm:$0xff] (!%p189_p2)  ;;  %v1494_v30 = vpack.c.bf16 (!%p189_p2), %v405_v25, %v404_v24  ;;  %v406_v31 = vld [vmem:[%s1859_s2 + $0xb0] sm:$0xff] (!%p189_p2) }
   0xc   : > { %1255 = vmatpush3.bf16.msra.mxu1 (!%p189_p2), %v1453_v18  ;;  %v407_v32 = vld [vmem:[%s1859_s2 + $0xb8] sm:$0xff] (!%p189_p2)  ;;  %v1504_v33 = vpack.c.bf16 (!%p189_p2), %v389_v29, %v388_v28  ;;  %v390_v35 = vld [vmem:[%s1859_s2 + $0x30] sm:$0xff] (!%p189_p2)  ;;  %v408_v38 = vld [vmem:[%s1859_s2 + $0xc0] sm:$0xff] (!%p189_p2) }
   0xd   : > { %s1864_s26 = smov (!%p218_p3, %s1100_s26), 15  ;;  %1251 = vmatpush1.bf16.msra.mxu0 %v1250_v16  ;;  %1257 = vmatprep.subr.bf16.mxu1 %v1465_v22  ;;  %v391_v36 = vld [vmem:[%s1859_s2 + $0x38] sm:$0xff]  ;;  %v1517_v37 = vpack.c.bf16 %v407_v32, %v406_v31  ;;  %v409_v39 = vld [vmem:[%s1859_s2 + $0xc8] sm:$0xff]  ;;  %v392_v42 = vld [vmem:[%s1859_s2 + $0x40] sm:$0xff] }
   0xe   : > { %s1101_s28 = sshll.u32 %s1864_s26, 3  ;;  %1285 = vmatprep.subr.bf16.mxu0 %v1451_v17  ;;  %v1527_v40 = vpack.c.bf16 %v391_v36, %v390_v35  ;;  %v393_v43 = vld [vmem:[%s1859_s2 + $0x48] sm:$0xff]  ;;  %v1540_v44 = vpack.c.bf16 %v409_v39, %v408_v38  ;;  %v410_v45 = vld [vmem:[%s1859_s2 + $0xd0] sm:$0xff]  ;;  %v411_v46 = vld [vmem:[%s1859_s2 + $0xd8] sm:$0xff]  ;;  %s1131_s23 = sshll.u32 %s1864_s26, 4 }
   0xf   : > { %s1473_s8 = scalar_lea.vmem %s1857_s0, %s1101_s28  ;;  %v1550_v47 = vpack.c.bf16 %v393_v43, %v392_v42  ;;  %v394_v49 = vld [vmem:[%s1859_s2 + $0x50] sm:$0xff]  ;;  %v395_v50 = vld [vmem:[%s1859_s2 + $0x58] sm:$0xff]  ;;  %v1563_v51 = vpack.c.bf16 %v411_v46, %v410_v45  ;;  %v412_v52 = vld [vmem:[%s1859_s2 + $0xe0] sm:$0xff]  ;;  %s1808_s27 = scalar_lea.vmem %s1862_s5, %s1131_s23 }
  0x10   : > { %v230_v27 = vld [vmem:[%s1473_s8] sm:$0xff]  ;;  %1259 = vmatpush3.bf16.msra.mxu1 %v1483_v26  ;;  %v231_v34 = vld [vmem:[%s1473_s8 + $0x8] sm:$0xff]  ;;  %v232_v41 = vld [vmem:[%s1473_s8 + $0x10] sm:$0xff]  ;;  %v1573_v54 = vpack.c.bf16 %v395_v50, %v394_v49 }
  0x11   : > { %1105 = vmatmul.mubr.msk.f32.vlgmr.msra.gmra.mrb[0].mxu0 %vm246_vm0, %v230_v27  ;;  %1261 = vmatprep.subr.bf16.mxu1 %v1494_v30  ;;  %v233_v48 = vld [vmem:[%s1473_s8 + $0x18] sm:$0xff]  ;;  %v413_v53 = vld [vmem:[%s1859_s2 + $0xe8] sm:$0xff]  ;;  %v234_v55 = vld [vmem:[%s1473_s8 + $0x20] sm:$0xff] }
  0x12   : > { %341 = vmatprep.mubr.f32.mxu0 %v1373_v7  ;;  %1287 = vmatpush3.bf16.msra.mxu0 %v1453_v18  ;;  %v396_v56 = vld [vmem:[%s1859_s2 + $0x60] sm:$0xff]  ;;  %v397_v57 = vld [vmem:[%s1859_s2 + $0x68] sm:$0xff]  ;;  %v1586_v58 = vpack.c.bf16 %v413_v53, %v412_v52  ;;  %v414_v59 = vld [vmem:[%s1859_s2 + $0xf0] sm:$0xff] }
  0x13   : > { %1289 = vmatprep.subr.bf16.mxu0 %v1465_v22  ;;  %v415_v60 = vld [vmem:[%s1859_s2 + $0xf8] sm:$0xff]  ;;  %v1596_v61 = vpack.c.bf16 %v397_v57, %v396_v56  ;;  %v235_v62 = vld [vmem:[%s1473_s8 + $0x28] sm:$0xff]  ;;  %v398_v63 = vld [vmem:[%s1859_s2 + $0x70] sm:$0xff] }
  0x14   : > { %1263 = vmatpush3.bf16.msra.mxu1 %v1504_v33  ;;  %v399_v0 = vld [vmem:[%s1859_s2 + $0x78] sm:$0xff]  ;;  %v1609_v1 = vpack.c.bf16 %v415_v60, %v414_v59  ;;  %v236_v3 = vld [vmem:[%s1473_s8 + $0x30] sm:$0xff]  ;;  %v683_v38 = vld [vmem:[%s1860_s3 + $0x8] sm:$0xff] }
  0x15   : > { %1106 = vmatmul.mubr.msk.f32.gmra.mrb[2].mxu0 %vm246_vm0, %v231_v34  ;;  %1265 = vmatprep.subr.bf16.mxu1 %v1517_v37  ;;  %v1613_v2 = vpack.c.bf16 %v399_v0, %v398_v63  ;;  %v237_v4 = vld [vmem:[%s1473_s8 + $0x38] sm:$0xff]  ;;  %v684_v42 = vld [vmem:[%s1860_s3 + $0x10] sm:$0xff] }
  0x16   : > { %347 = vmatprep.mubr.f32.mxu0 %v1373_v7  ;;  %1291 = vmatpush3.bf16.msra.mxu0 %v1483_v26  ;;  %v685_v39 = vld [vmem:[%s1860_s3 + $0x18] sm:$0xff] }
  0x17   : > { %1293 = vmatprep.subr.bf16.mxu0 %v1494_v30 }
  0x18   : > { %1267 = vmatpush3.bf16.msra.mxu1 %v1527_v40 }
  0x19   : > { %1107 = vmatmul.mubr.msk.f32.gmra.mrb[4].mxu0 %vm246_vm0, %v232_v41  ;;  %1269 = vmatprep.subr.bf16.mxu1 %v1540_v44  ;;  %v682_v41 = vld [vmem:[%s1860_s3] sm:$0xff] }
  0x1a   : > { %353 = vmatprep.mubr.f32.mxu0 %v1373_v7  ;;  %1295 = vmatpush3.bf16.msra.mxu0 %v1504_v33  ;;  %v1318_v43 = vpack.c.bf16 %v684_v42, %v682_v41 }
  0x1b   : > { %1297 = vmatprep.subr.bf16.mxu0 %v1517_v37 }
  0x1c   : > { %1271 = vmatpush3.bf16.msra.mxu1 %v1550_v47 }
  0x1d   : > { %1108 = vmatmul.mubr.msk.f32.gmra.mrb[6].mxu0 %vm246_vm0, %v233_v48  ;;  %1273 = vmatprep.subr.bf16.mxu1 %v1563_v51 }
  0x1e   : > { %359 = vmatprep.mubr.f32.mxu0 %v1373_v7  ;;  %1299 = vmatpush3.bf16.msra.mxu0 %v1527_v40 }
  0x1f   : > { %1301 = vmatprep.subr.bf16.mxu0 %v1540_v44 }
  0x20   : > { %1275 = vmatpush3.bf16.msra.mxu1 %v1573_v54 }
  0x21   : > { %1109 = vmatmul.mubr.msk.f32.gmra.mrb[8].mxu0 %vm246_vm0, %v234_v55  ;;  %1277 = vmatprep.subr.bf16.mxu1 %v1586_v58 }
  0x22   : > { %365 = vmatprep.mubr.f32.mxu0 %v1373_v7  ;;  %1303 = vmatpush3.bf16.msra.mxu0 %v1550_v47 }
  0x23   : > { %1305 = vmatprep.subr.bf16.mxu0 %v1563_v51 }
  0x24   : > { %1279 = vmatpush3.bf16.msra.mxu1 %v1596_v61 }
  0x25   : > { %1110 = vmatmul.mubr.msk.f32.gmra.mrb[10].mxu0 %vm246_vm0, %v235_v62  ;;  %1281 = vmatprep.subr.bf16.mxu1 %v1609_v1 }
  0x26   : > { %371 = vmatprep.mubr.f32.mxu0 %v1373_v7  ;;  %1307 = vmatpush3.bf16.msra.mxu0 %v1573_v54 }
  0x27   : > { %1309 = vmatprep.subr.bf16.mxu0 %v1586_v58 }
  0x28   : > { %1283 = vmatpush3.bf16.msra.mxu1 %v1613_v2 }
  0x29   : > { %1111 = vmatmul.mubr.msk.f32.gmra.mrb[12].mxu0 %vm246_vm0, %v236_v3  ;;  %1324 = vmatprep.subr.bf16.mxu1 %v1451_v17 }
  0x2a   : > { %377 = vmatprep.mubr.f32.mxu0 %v1373_v7  ;;  %1311 = vmatpush3.bf16.msra.mxu0 %v1596_v61 }
  0x2b   : > { %1313 = vmatprep.subr.bf16.mxu0 %v1609_v1 }
  0x2d   : > { %1112 = vmatmul.mubr.msk.f32.gmra.mrb[14].mxu0 %vm246_vm0, %v237_v4 }
  0x2e   : > { %1315 = vmatpush3.bf16.msra.mxu0 %v1613_v2 }
  0xe4   : > { %v1629_v5 = vpop.f32.mrb[0].mxu0 }
  0xe5   : > { %v1631_v6 = vpop.f32.mrb[1].mxu0  ;;  %v521_v9 = vmul.f32 %v1629_v5, %v1629_v5 }
  0xe6   : > { %v522_v8 = vmul.f32 %v1631_v6, %v1631_v6  ;;  %480 = vmatprep.mubr.f32.mxu1 %v1631_v6 }
  0xe7   : > { %481 = vmatmul.mubr.f32.vlgmr.msra.gmra.mrb[0].mxu1 %v1629_v5 }
  0xe8   : > { %1332 = vmatpush3.bf16.msra.mxu1 %v1453_v18  ;;  %v1640_v10 = vpop.f32.mrb[2].mxu0  ;;  %601 = vmatprep.mubr.f32.mxu0 %v522_v8 }
  0xe9   : > { %v1642_v11 = vpop.f32.mrb[3].mxu0  ;;  %602 = vmatmul.mubr.f32.vlgmr.msra.gmra.mrb[16].mxu0 %v521_v9  ;;  %1325 = vmatprep.subr.bf16.mxu1 %v1465_v22  ;;  %v523_v13 = vmul.f32 %v1640_v10, %v1640_v10 }
  0xea   : > { %v524_v12 = vmul.f32 %v1642_v11, %v1642_v11  ;;  %485 = vmatprep.mubr.f32.mxu1 %v1642_v11 }
  0xeb   : > { %486 = vmatmul.mubr.f32.gmra.mrb[2].mxu1 %v1640_v10 }
  0xec   : > { %1333 = vmatpush3.bf16.msra.mxu1 %v1483_v26  ;;  %v1652_v14 = vpop.f32.mrb[4].mxu0  ;;  %606 = vmatprep.mubr.f32.mxu0 %v524_v12 }
  0xed   : > { %v1654_v15 = vpop.f32.mrb[5].mxu0  ;;  %607 = vmatmul.mubr.f32.gmra.mrb[18].mxu0 %v523_v13  ;;  %1326 = vmatprep.subr.bf16.mxu1 %v1494_v30  ;;  %v525_v17 = vmul.f32 %v1652_v14, %v1652_v14 }
  0xee   : > { %v526_v16 = vmul.f32 %v1654_v15, %v1654_v15  ;;  %490 = vmatprep.mubr.f32.mxu1 %v1654_v15 }
  0xef   : > { %491 = vmatmul.mubr.f32.gmra.mrb[4].mxu1 %v1652_v14 }
  0xf0   : > { %1334 = vmatpush3.bf16.msra.mxu1 %v1504_v33  ;;  %v1664_v18 = vpop.f32.mrb[6].mxu0  ;;  %611 = vmatprep.mubr.f32.mxu0 %v526_v16 }
  0xf1   : > { %v1666_v19 = vpop.f32.mrb[7].mxu0  ;;  %612 = vmatmul.mubr.f32.gmra.mrb[20].mxu0 %v525_v17  ;;  %1327 = vmatprep.subr.bf16.mxu1 %v1517_v37  ;;  %v527_v21 = vmul.f32 %v1664_v18, %v1664_v18 }
  0xf2   : > { %v528_v20 = vmul.f32 %v1666_v19, %v1666_v19  ;;  %495 = vmatprep.mubr.f32.mxu1 %v1666_v19 }
  0xf3   : > { %496 = vmatmul.mubr.f32.gmra.mrb[6].mxu1 %v1664_v18 }
  0xf4   : > { %1335 = vmatpush3.bf16.msra.mxu1 %v1527_v40  ;;  %v1676_v22 = vpop.f32.mrb[8].mxu0  ;;  %616 = vmatprep.mubr.f32.mxu0 %v528_v20  ;;  %v1316_v40 = vpack.c.bf16 %v685_v39, %v683_v38 }
  0xf5   : > { %v1678_v23 = vpop.f32.mrb[9].mxu0  ;;  %617 = vmatmul.mubr.f32.gmra.mrb[22].mxu0 %v527_v21  ;;  %1328 = vmatprep.subr.bf16.mxu1 %v1540_v44  ;;  %v529_v25 = vmul.f32 %v1676_v22, %v1676_v22 }
  0xf6   : > { %v530_v24 = vmul.f32 %v1678_v23, %v1678_v23  ;;  %500 = vmatprep.mubr.f32.mxu1 %v1678_v23  ;;  %1321 = vmatprep.subr.bf16.mxu0 %v1316_v40 }
  0xf7   : > { %501 = vmatmul.mubr.f32.gmra.mrb[8].mxu1 %v1676_v22  ;;  %1323 = vmatpush1.bf16.msra.mxu0 %v1318_v43 }
  0xf8   : > { %1336 = vmatpush3.bf16.msra.mxu1 %v1550_v47  ;;  %v1688_v26 = vpop.f32.mrb[10].mxu0  ;;  %621 = vmatprep.mubr.f32.mxu0 %v530_v24 }
  0xf9   : > { %v1690_v27 = vpop.f32.mrb[11].mxu0  ;;  %622 = vmatmul.mubr.f32.gmra.mrb[24].mxu0 %v529_v25  ;;  %1329 = vmatprep.subr.bf16.mxu1 %v1563_v51  ;;  %v531_v29 = vmul.f32 %v1688_v26, %v1688_v26 }
  0xfa   : > { %v532_v28 = vmul.f32 %v1690_v27, %v1690_v27  ;;  %505 = vmatprep.mubr.f32.mxu1 %v1690_v27 }
  0xfb   : > { %506 = vmatmul.mubr.f32.gmra.mrb[10].mxu1 %v1688_v26 }
  0xfc   : > { %1337 = vmatpush3.bf16.msra.mxu1 %v1573_v54  ;;  %v1700_v30 = vpop.f32.mrb[12].mxu0  ;;  %626 = vmatprep.mubr.f32.mxu0 %v532_v28 }
  0xfd   : > { %v1702_v31 = vpop.f32.mrb[13].mxu0  ;;  %627 = vmatmul.mubr.f32.gmra.mrb[26].mxu0 %v531_v29  ;;  %1330 = vmatprep.subr.bf16.mxu1 %v1586_v58  ;;  %v533_v33 = vmul.f32 %v1700_v30, %v1700_v30 }
  0xfe   : > { %v534_v32 = vmul.f32 %v1702_v31, %v1702_v31  ;;  %510 = vmatprep.mubr.f32.mxu1 %v1702_v31 }
  0xff   : > { %511 = vmatmul.mubr.f32.gmra.mrb[12].mxu1 %v1700_v30 }
 0x100   : > { %1338 = vmatpush3.bf16.msra.mxu1 %v1596_v61  ;;  %v1712_v34 = vpop.f32.mrb[14].mxu0  ;;  %631 = vmatprep.mubr.f32.mxu0 %v534_v32 }
 0x101   : > { %v1714_v35 = vpop.f32.mrb[15].mxu0  ;;  %632 = vmatmul.mubr.f32.gmra.mrb[28].mxu0 %v533_v33  ;;  %1331 = vmatprep.subr.bf16.mxu1 %v1609_v1  ;;  %v535_v37 = vmul.f32 %v1712_v34, %v1712_v34 }
 0x102   : > { %v536_v36 = vmul.f32 %v1714_v35, %v1714_v35  ;;  %515 = vmatprep.mubr.f32.mxu1 %v1714_v35  ;;  %940 = vmatprep.mubr.f32.mxu0 %v1373_v7 }
 0x103   : > { %516 = vmatmul.mubr.f32.gmra.mrb[14].mxu1 %v1712_v34 }
 0x104   : > { %1339 = vmatpush3.bf16.msra.mxu1 %v1613_v2  ;;  %636 = vmatprep.mubr.f32.mxu1 %v536_v36 }
 0x105   : > { %1317 = vmatprep.subr.bf16.mxu1 %v1316_v40 }
 0x107   : > { %637 = vmatmul.mubr.f32.vlgmr.msra.gmra.mrb[16].mxu1 %v535_v37 }
 0x108   : > { %775 = vmatprep.mubr.f32.mxu1 %v1373_v7  ;;  %1319 = vmatpush1.bf16.msra.mxu1 %v1318_v43 }
 0x1ba   : > { %v1164_v44 = vpop.f32.mrb[0].mxu1 }
 0x1bb   : > { %v1165_v45 = vpop.f32.mrb[1].mxu1 }
 0x1bc   : > { %v1166_v46 = vadd.f32 %v1165_v45, %v1164_v44  ;;  %v1220_v47 = vpop.f32.mrb[16].mxu0 }
 0x1bd   : > { %v1221_v48 = vpop.f32.mrb[17].mxu0 }
 0x1be   : > { %v642_v49 = vmul.f32 %v1166_v46, %v1166_v46  ;;  %v1222_v50 = vadd.f32 %v1221_v48, %v1220_v47  ;;  %v1167_v51 = vpop.f32.mrb[2].mxu1 }
 0x1bf   : > { %v1168_v52 = vpop.f32.mrb[3].mxu1 }
 0x1c0   : > { %v650_v53 = vsub.f32 %v1222_v50, %v642_v49  ;;  %v1738_v54 = vadd.f32 %v1168_v52, %v1167_v51  ;;  %v1223_v55 = vpop.f32.mrb[18].mxu0 }
 0x1c1   : > { %v1224_v56 = vpop.f32.mrb[19].mxu0 }
 0x1c2   : > { %v658_v57 = vmax.f32 %v650_v53, 0.0  ;;  %v643_v58 = vmul.f32 %v1738_v54, %v1738_v54  ;;  %v1225_v59 = vadd.f32 %v1224_v56, %v1223_v55  ;;  %v1170_v60 = vpop.f32.mrb[4].mxu1 }
 0x1c3   : > { %v1171_v61 = vpop.f32.mrb[5].mxu1 }
 0x1c4   : > { %v666_v62 = vadd.f32 1e-05, %v658_v57  ;;  %v651_v63 = vsub.f32 %v1225_v59, %v643_v58  ;;  %v1742_v0 = vadd.f32 %v1171_v61, %v1170_v60  ;;  %v1226_v1 = vpop.f32.mrb[20].mxu0 }
 0x1c5   : > { %v1227_v2 = vpop.f32.mrb[21].mxu0 }
 0x1c6   : > { %1349 = vrsqrt.f32 %v666_v62  ;;  %v659_v3 = vmax.f32 %v651_v63, 0.0  ;;  %v644_v4 = vmul.f32 %v1742_v0, %v1742_v0  ;;  %v1228_v8 = vadd.f32 %v1227_v2, %v1226_v1  ;;  %v1173_v9 = vpop.f32.mrb[6].mxu1 }
 0x1c7   : > { %v1174_v12 = vpop.f32.mrb[7].mxu1 }
 0x1c8   : > { %v667_v13 = vadd.f32 1e-05, %v659_v3  ;;  %v652_v16 = vsub.f32 %v1228_v8, %v644_v4  ;;  %v1746_v17 = vadd.f32 %v1174_v12, %v1173_v9  ;;  %v1229_v20 = vpop.f32.mrb[22].mxu0 }
 0x1c9   : > { %v1230_v21 = vpop.f32.mrb[23].mxu0 }
 0x1ca   : > { %1351 = vrsqrt.f32 %v667_v13  ;;  %v660_v24 = vmax.f32 %v652_v16, 0.0  ;;  %v645_v25 = vmul.f32 %v1746_v17, %v1746_v17  ;;  %v1231_v28 = vadd.f32 %v1230_v21, %v1229_v20  ;;  %v1176_v29 = vpop.f32.mrb[8].mxu1 }
 0x1cb   : > { %v1177_v32 = vpop.f32.mrb[9].mxu1 }
 0x1cc   : > { %v668_v33 = vadd.f32 1e-05, %v660_v24  ;;  %v653_v36 = vsub.f32 %v1231_v28, %v645_v25  ;;  %v1750_v37 = vadd.f32 %v1177_v32, %v1176_v29  ;;  %v1232_v38 = vpop.f32.mrb[24].mxu0 }
 0x1cd   : > { %v1233_v39 = vpop.f32.mrb[25].mxu0 }
 0x1ce   : > { %1353 = vrsqrt.f32 %v668_v33  ;;  %v661_v40 = vmax.f32 %v653_v36, 0.0  ;;  %v646_v41 = vmul.f32 %v1750_v37, %v1750_v37  ;;  %v1234_v42 = vadd.f32 %v1233_v39, %v1232_v38  ;;  %v1179_v43 = vpop.f32.mrb[10].mxu1 }
 0x1cf   : > { %v1180_v44 = vpop.f32.mrb[11].mxu1 }
 0x1d0   : > { %v1350_v45 = vpop.eup %1349  ;;  %v669_v47 = vadd.f32 1e-05, %v661_v40  ;;  %v654_v48 = vsub.f32 %v1234_v42, %v646_v41  ;;  %v1754_v49 = vadd.f32 %v1180_v44, %v1179_v43  ;;  %v1235_v50 = vpop.f32.mrb[26].mxu0 }
 0x1d1   : > { %v824_v51 = vmul.f32 %v1350_v45, %v1166_v46  ;;  %v1236_v52 = vpop.f32.mrb[27].mxu0  ;;  %1113 = vmatmul.mubr.msk.f32.vlgmr.msra.gmra.mrb[18].mxu1 %vm686_vm1, %v1350_v45 }
 0x1d2   : > { %1355 = vrsqrt.f32 %v669_v47  ;;  %v662_v53 = vmax.f32 %v654_v48, 0.0  ;;  %v647_v55 = vmul.f32 %v1754_v49, %v1754_v49  ;;  %v1237_v56 = vadd.f32 %v1236_v52, %v1235_v50  ;;  %v1182_v57 = vpop.f32.mrb[12].mxu1  ;;  %781 = vmatprep.mubr.f32.mxu1 %v1373_v7 }
 0x1d3   : > { %v832_v58 = vsub.f32 0.0, %v824_v51  ;;  %v1183_v59 = vpop.f32.mrb[13].mxu1 }
 0x1d4   : > { %v1352_v60 = vpop.eup %1351  ;;  %v670_v61 = vadd.f32 1e-05, %v662_v53  ;;  %v655_v62 = vsub.f32 %v1237_v56, %v647_v55  ;;  %v1184_v63 = vadd.f32 %v1183_v59, %v1182_v57  ;;  %v1238_v1 = vpop.f32.mrb[28].mxu0  ;;  %v842_v56 = vlaneseq  ;;  %v840_v59 = vld [vmem:[%s1861_s4] sm:$0x3] }
 0x1d5   : > { %v1239_v46 = vpop.f32.mrb[29].mxu0  ;;  %1114 = vmatmul.mubr.msk.f32.gmra.mrb[20].mxu1 %vm686_vm1, %v1352_v60  ;;  %1121 = vmatmul.mubr.msk.f32.vlgmr.msra.gmra.mrb[30].mxu0 %vm686_vm1, %v832_v58  ;;  %v825_v2 = vmul.f32 %v1352_v60, %v1738_v54 }
 0x1d6   : > { %1357 = vrsqrt.f32 %v670_v61  ;;  %v663_v3 = vmax.f32 %v655_v62, 0.0  ;;  %v648_v4 = vmul.f32 %v1184_v63, %v1184_v63  ;;  %v1240_v8 = vadd.f32 %v1239_v46, %v1238_v1  ;;  %v1185_v9 = vpop.f32.mrb[14].mxu1  ;;  %787 = vmatprep.mubr.f32.mxu1 %v1373_v7  ;;  %946 = vmatprep.mubr.f32.mxu0 %v1373_v7 }
 0x1d7   : > { %v1186_v12 = vpop.f32.mrb[15].mxu1  ;;  %v833_v13 = vsub.f32 0.0, %v825_v2  ;;  %v843_v57 = vshrl.u32 %v842_v56, 7 }
 0x1d8   : > { %v1354_v16 = vpop.eup %1353  ;;  %v671_v20 = vadd.f32 1e-05, %v663_v3  ;;  %v656_v21 = vsub.f32 %v1240_v8, %v648_v4  ;;  %v1187_v24 = vadd.f32 %v1186_v12, %v1185_v9 }
 0x1d9   : > { %1115 = vmatmul.mubr.msk.f32.gmra.mrb[22].mxu1 %vm686_vm1, %v1354_v16  ;;  %1122 = vmatmul.mubr.msk.f32.gmra.mrb[32].mxu0 %vm686_vm1, %v833_v13  ;;  %v826_v54 = vmul.f32 %v1354_v16, %v1742_v0  ;;  %v844_v58 = vsub.s32 0, %v843_v57  ;;  %v848_v60 = vsub.s32 1, %v843_v57 }
 0x1da   : > { %1359 = vrsqrt.f32 %v671_v20  ;;  %v664_v25 = vmax.f32 %v656_v21, 0.0  ;;  %v1241_v28 = vpop.f32.mrb[16].mxu1  ;;  %793 = vmatprep.mubr.f32.mxu1 %v1373_v7  ;;  %952 = vmatprep.mubr.f32.mxu0 %v1373_v7  ;;  %v649_v38 = vmul.f32 %v1187_v24, %v1187_v24 }
 0x1db   : > { %v1242_v29 = vpop.f32.mrb[17].mxu1  ;;  %v834_v32 = vsub.f32 0.0, %v826_v54  ;;  %v1800_v46 = vrot.slane %v840_v59, %v848_v60 }
 0x1dc   : > { %v1356_v33 = vpop.eup %1355  ;;  %v672_v36 = vadd.f32 1e-05, %v664_v25  ;;  %v1243_v39 = vadd.f32 %v1242_v29, %v1241_v28 }
 0x1dd   : > { %1116 = vmatmul.mubr.msk.f32.gmra.mrb[24].mxu1 %vm686_vm1, %v1356_v33  ;;  %1123 = vmatmul.mubr.msk.f32.gmra.mrb[34].mxu0 %vm686_vm1, %v834_v32  ;;  %v827_v40 = vmul.f32 %v1356_v33, %v1746_v17 }
 0x1de   : > { %1361 = vrsqrt.f32 %v672_v36  ;;  %v657_v0 = vsub.f32 %v1243_v39, %v649_v38  ;;  %799 = vmatprep.mubr.f32.mxu1 %v1373_v7  ;;  %958 = vmatprep.mubr.f32.mxu0 %v1373_v7 }
 0x1df   : > { %v835_v41 = vsub.f32 0.0, %v827_v40 }
 0x1e0   : > { %v1358_v42 = vpop.eup %1357  ;;  %v665_v43 = vmax.f32 %v657_v0, 0.0 }
 0x1e1   : > { %1117 = vmatmul.mubr.msk.f32.gmra.mrb[26].mxu1 %vm686_vm1, %v1358_v42  ;;  %1124 = vmatmul.mubr.msk.f32.gmra.mrb[36].mxu0 %vm686_vm1, %v835_v41  ;;  %v828_v44 = vmul.f32 %v1358_v42, %v1750_v37 }
 0x1e2   : > { %v673_v45 = vadd.f32 1e-05, %v665_v43  ;;  %805 = vmatprep.mubr.f32.mxu1 %v1373_v7  ;;  %964 = vmatprep.mubr.f32.mxu0 %v1373_v7 }
 0x1e3   : > { %v836_v17 = vsub.f32 0.0, %v828_v44 }
 0x1e4   : > { %v1360_v47 = vpop.eup %1359  ;;  %1363 = vrsqrt.f32 %v673_v45 }
 0x1e5   : > { %1118 = vmatmul.mubr.msk.f32.gmra.mrb[28].mxu1 %vm686_vm1, %v1360_v47  ;;  %1125 = vmatmul.mubr.msk.f32.gmra.mrb[38].mxu0 %vm686_vm1, %v836_v17  ;;  %v829_v48 = vmul.f32 %v1360_v47, %v1754_v49 }
 0x1e6   : > { %811 = vmatprep.mubr.f32.mxu1 %v1373_v7  ;;  %970 = vmatprep.mubr.f32.mxu0 %v1373_v7 }
 0x1e7   : > { %v837_v50 = vsub.f32 0.0, %v829_v48 }
 0x1e8   : > { %v1362_v37 = vpop.eup %1361 }
 0x1e9   : > { %1119 = vmatmul.mubr.msk.f32.gmra.mrb[30].mxu1 %vm686_vm1, %v1362_v37  ;;  %1126 = vmatmul.mubr.msk.f32.gmra.mrb[40].mxu0 %vm686_vm1, %v837_v50  ;;  %v830_v51 = vmul.f32 %v1362_v37, %v1184_v63 }
 0x1ea   : > { %976 = vmatprep.mubr.f32.mxu0 %v1373_v7  ;;  %817 = vmatprep.mubr.f32.mxu1 %v1373_v7 }
 0x1eb   : > { %v838_v52 = vsub.f32 0.0, %v830_v51 }
 0x1ed   : > { %1127 = vmatmul.mubr.msk.f32.gmra.mrb[42].mxu0 %vm686_vm1, %v838_v52 }
 0x1ee   : > { %v1364_v53 = vpop.eup %1363  ;;  %982 = vmatprep.mubr.f32.mxu0 %v1373_v7  ;;  %v1797_v7 = vrot.slane %v840_v59, %v844_v58 }
 0x1ef   : > { %1120 = vmatmul.mubr.msk.f32.gmra.mrb[32].mxu1 %vm686_vm1, %v1364_v53  ;;  %v831_v49 = vmul.f32 %v1364_v53, %v1187_v24 }
 0x1f1   : > { %v839_v55 = vsub.f32 0.0, %v831_v49 }
 0x1f3   : > { %1128 = vmatmul.mubr.msk.f32.gmra.mrb[44].mxu0 %vm686_vm1, %v839_v55 }
 0x2a4   : > { %v777_v61 = vpop.f32.mrb[18].mxu1 }
 0x2a5   : > { %v989_v62 = vmul.f32 %v777_v61, %v1629_v5  ;;  %v779_v63 = vpop.f32.mrb[19].mxu1 }
 0x2a6   : > { %v990_v1 = vmul.f32 %v779_v63, %v1631_v6 }
 0x2a8   : > { %v783_v2 = vpop.f32.mrb[20].mxu1  ;;  %v942_v3 = vpop.f32.mrb[30].mxu0 }
 0x2a9   : > { %v991_v4 = vmul.f32 %v783_v2, %v1640_v10  ;;  %v943_v8 = vadd.f32 %v942_v3, %v1797_v7  ;;  %v785_v9 = vpop.f32.mrb[21].mxu1  ;;  %v944_v12 = vpop.f32.mrb[31].mxu0 }
 0x2aa   : > { %v992_v5 = vmul.f32 %v785_v9, %v1642_v11  ;;  %v945_v6 = vadd.f32 %v944_v12, %v1800_v46 }
 0x2ab   : > { %v1005_v13 = vadd.f32 %v989_v62, %v943_v8 }
 0x2ac   : > { %v1006_v16 = vadd.f32 %v990_v1, %v945_v6  ;;  %v789_v20 = vpop.f32.mrb[22].mxu1  ;;  %v948_v10 = vpop.f32.mrb[32].mxu0 }
 0x2ad   : > { %1021 = vst [vmem:[%s1808_s27] sm:$0xff] %v1005_v13  ;;  %v993_v21 = vmul.f32 %v789_v20, %v1652_v14  ;;  %v949_v24 = vadd.f32 %v948_v10, %v1797_v7  ;;  %v791_v54 = vpop.f32.mrb[23].mxu1  ;;  %v950_v25 = vpop.f32.mrb[33].mxu0 }
 0x2ae   : > { %1022 = vst [vmem:[%s1808_s27 + $0x8] sm:$0xff] %v1006_v16  ;;  %v994_v28 = vmul.f32 %v791_v54, %v1654_v15  ;;  %v951_v11 = vadd.f32 %v950_v25, %v1800_v46 }
 0x2af   : > { %v1007_v29 = vadd.f32 %v991_v4, %v949_v24 }
 0x2b0   : > { %v1008_v32 = vadd.f32 %v992_v5, %v951_v11  ;;  %v795_v33 = vpop.f32.mrb[24].mxu1  ;;  %v954_v36 = vpop.f32.mrb[34].mxu0 }
 0x2b1   : > { %1023 = vst [vmem:[%s1808_s27 + $0x10] sm:$0xff] %v1007_v29  ;;  %v995_v38 = vmul.f32 %v795_v33, %v1664_v18  ;;  %v955_v14 = vadd.f32 %v954_v36, %v1797_v7  ;;  %v797_v39 = vpop.f32.mrb[25].mxu1  ;;  %v956_v40 = vpop.f32.mrb[35].mxu0 }
 0x2b2   : > { %1024 = vst [vmem:[%s1808_s27 + $0x18] sm:$0xff] %v1008_v32  ;;  %v996_v0 = vmul.f32 %v797_v39, %v1666_v19  ;;  %v957_v15 = vadd.f32 %v956_v40, %v1800_v46 }
 0x2b3   : > { %v1009_v41 = vadd.f32 %v993_v21, %v955_v14 }
 0x2b4   : > { %v1010_v42 = vadd.f32 %v994_v28, %v957_v15  ;;  %v801_v43 = vpop.f32.mrb[26].mxu1  ;;  %v960_v44 = vpop.f32.mrb[36].mxu0 }
 0x2b5   : > { %1025 = vst [vmem:[%s1808_s27 + $0x20] sm:$0xff] %v1009_v41  ;;  %v997_v45 = vmul.f32 %v801_v43, %v1676_v22  ;;  %v961_v18 = vadd.f32 %v960_v44, %v1797_v7  ;;  %v803_v17 = vpop.f32.mrb[27].mxu1  ;;  %v962_v47 = vpop.f32.mrb[37].mxu0 }
 0x2b6   : > { %1026 = vst [vmem:[%s1808_s27 + $0x28] sm:$0xff] %v1010_v42  ;;  %v998_v48 = vmul.f32 %v803_v17, %v1678_v23  ;;  %v963_v19 = vadd.f32 %v962_v47, %v1800_v46 }
 0x2b7   : > { %v1011_v50 = vadd.f32 %v995_v38, %v961_v18 }
 0x2b8   : > { %v1012_v37 = vadd.f32 %v996_v0, %v963_v19  ;;  %v807_v51 = vpop.f32.mrb[28].mxu1  ;;  %v966_v52 = vpop.f32.mrb[38].mxu0 }
 0x2b9   : > { %1027 = vst [vmem:[%s1808_s27 + $0x30] sm:$0xff] %v1011_v50  ;;  %v999_v53 = vmul.f32 %v807_v51, %v1688_v26  ;;  %v967_v22 = vadd.f32 %v966_v52, %v1797_v7  ;;  %v809_v49 = vpop.f32.mrb[29].mxu1  ;;  %v968_v55 = vpop.f32.mrb[39].mxu0 }
 0x2ba   : > { %1028 = vst [vmem:[%s1808_s27 + $0x38] sm:$0xff] %v1012_v37  ;;  %v1000_v56 = vmul.f32 %v809_v49, %v1690_v27  ;;  %v969_v23 = vadd.f32 %v968_v55, %v1800_v46 }
 0x2bb   : > { %v1013_v57 = vadd.f32 %v997_v45, %v967_v22 }
 0x2bc   : > { %v1014_v58 = vadd.f32 %v998_v48, %v969_v23  ;;  %v813_v59 = vpop.f32.mrb[30].mxu1  ;;  %v972_v60 = vpop.f32.mrb[40].mxu0 }
 0x2bd   : > { %1029 = vst [vmem:[%s1808_s27 + $0x40] sm:$0xff] %v1013_v57  ;;  %v1001_v61 = vmul.f32 %v813_v59, %v1700_v30  ;;  %v973_v26 = vadd.f32 %v972_v60, %v1797_v7  ;;  %v815_v62 = vpop.f32.mrb[31].mxu1  ;;  %v974_v63 = vpop.f32.mrb[41].mxu0 }
 0x2be   : > { %1030 = vst [vmem:[%s1808_s27 + $0x48] sm:$0xff] %v1014_v58  ;;  %v1002_v1 = vmul.f32 %v815_v62, %v1702_v31  ;;  %v975_v27 = vadd.f32 %v974_v63, %v1800_v46 }
 0x2bf   : > { %v1015_v2 = vadd.f32 %v999_v53, %v973_v26 }
 0x2c0   : > { %v1016_v3 = vadd.f32 %v1000_v56, %v975_v27  ;;  %v978_v4 = vpop.f32.mrb[42].mxu0 }
 0x2c1   : > { %1031 = vst [vmem:[%s1808_s27 + $0x50] sm:$0xff] %v1015_v2  ;;  %v979_v8 = vadd.f32 %v978_v4, %v1797_v7  ;;  %v980_v9 = vpop.f32.mrb[43].mxu0 }
 0x2c2   : > { %1032 = vst [vmem:[%s1808_s27 + $0x58] sm:$0xff] %v1016_v3  ;;  %v981_v30 = vadd.f32 %v980_v9, %v1800_v46  ;;  %v819_v12 = vpop.f32.mrb[32].mxu1 }
 0x2c3   : > { %v1017_v5 = vadd.f32 %v1001_v61, %v979_v8  ;;  %v1003_v31 = vmul.f32 %v819_v12, %v1712_v34  ;;  %v821_v6 = vpop.f32.mrb[33].mxu1 }
 0x2c4   : > { %v1018_v13 = vadd.f32 %v1002_v1, %v981_v30  ;;  %v1004_v16 = vmul.f32 %v821_v6, %v1714_v35 }
 0x2c5   : > { %1033 = vst [vmem:[%s1808_s27 + $0x60] sm:$0xff] %v1017_v5 }
 0x2c6   : > { %1034 = vst [vmem:[%s1808_s27 + $0x68] sm:$0xff] %v1018_v13  ;;  %v984_v20 = vpop.f32.mrb[44].mxu0 }
 0x2c7   : > { %v985_v10 = vadd.f32 %v984_v20, %v1797_v7  ;;  %v986_v21 = vpop.f32.mrb[45].mxu0 }
 0x2c8   : > { %v987_v24 = vadd.f32 %v986_v21, %v1800_v46 }
 0x2c9   : > { %v1019_v54 = vadd.f32 %v1003_v31, %v985_v10 }
 0x2ca   : > { %v1020_v25 = vadd.f32 %v1004_v16, %v987_v24 }
 0x2cb   : > { %1035 = vst [vmem:[%s1808_s27 + $0x70] sm:$0xff] %v1019_v54 }
 0x2cc   : > { %1036 = vst [vmem:[%s1808_s27 + $0x78] sm:$0xff] %v1020_v25 }
 0x2cd PF: > { %s15_s18 = sadd.s32 1, %s1371_s18  }
 0x2ce   : > { %p12_p4 = scmp.ge.s32.totalorder %s15_s18, 4  }
 0x2d0   :  { %14 = sbr.rel (!%p12_p4) target bundleno = 1 (0x1), region = 70 }

</bundles_post_ra>
